<compile_context>
chip_gen: v7x
topology: tpu7x:2x2x1
jax: 0.10.0
libtpu: 0.0.40
codegen_flags: <defaults>
</compile_context>

<pallas_src>
import math

import jax
import jax.numpy as jnp
import numpy as np
from jax.experimental import pallas as pl
from jax.experimental.pallas import tpu as pltpu


def _round_up(x, m):
    return (x + m - 1) // m * m


# ----------------------------------------------------------------------------
# Fused kernel: (E,K) @ (K,TN) projection + bias + LayerNorm(embed_dim) affine.
# ----------------------------------------------------------------------------
def patch_embed_kernel(x_ref, w_ref, b_ref, g_ref, beta_ref, o_ref):
    # x_ref:   (K, TN)  flattened patches (patch pixels on sublanes, patches on lanes)
    # w_ref:   (E, K)   projection weight (PyTorch conv weight flattened)
    # b_ref:   (E, 1)   projection bias
    # g_ref:   (E, 1)   LayerNorm weight
    # beta_ref:(E, 1)   LayerNorm bias
    # o_ref:   (E, TN)  lane-dense output tile
    y = jnp.dot(w_ref[...], x_ref[...], preferred_element_type=jnp.float32)
    y = y + b_ref[...]
    mean = jnp.mean(y, axis=0, keepdims=True)            # reduce over embed dim
    yc = y - mean
    var = jnp.mean(yc * yc, axis=0, keepdims=True)       # biased variance (LayerNorm)
    o_ref[...] = (yc * jax.lax.rsqrt(var + 1e-5)) * g_ref[...] + beta_ref[...]


# ----------------------------------------------------------------------------
# Forward wrapper: boundary padding + patchify (XLA layout glue) + fused kernel.
# Input/output follow the PyTorch module: NCDHW in, NCDHW out.
# ----------------------------------------------------------------------------
def patch_embedding_forward(params, x, patch_size, *, tile_n=1024):
    pd, ph, pw = patch_size
    B, Cin, D, H, W = x.shape

    # Pad spatial dims up to multiples of the patch size (matches nnf.pad).
    pad_d, pad_h, pad_w = (-D) % pd, (-H) % ph, (-W) % pw
    if pad_d or pad_h or pad_w:
        x = jnp.pad(x, ((0, 0), (0, 0), (0, pad_d), (0, pad_h), (0, pad_w)))
    Dq, Hq, Wq = D + pad_d, H + pad_h, W + pad_w
    Dn, Hn, Wn = Dq // pd, Hq // ph, Wq // pw
    Np = Dn * Hn * Wn
    K = Cin * pd * ph * pw
    E = params["proj_b"].shape[0]

    # Patchify (layout plumbing, outside the kernel):
    # (B,Cin,Dq,Hq,Wq) -> (B,Cin,Dn,pd,Hn,ph,Wn,pw) -> (B,Cin,pd,ph,pw,Dn,Hn,Wn)
    # -> (B, K, Np).  K flattening order (Cin,pd,ph,pw) matches the PyTorch
    # conv weight flattening, Np ordering (Dn,Hn,Wn) matches conv output order.
    xp = x.reshape(B, Cin, Dn, pd, Hn, ph, Wn, pw)
    xp = xp.transpose(0, 1, 3, 5, 7, 2, 4, 6).reshape(B, K, Np)

    # Tile the patch axis in lane-aligned (128-multiple) chunks.
    TN = min(int(tile_n), _round_up(Np, 128))
    Np_pad = _round_up(Np, TN)
    if Np_pad != Np:
        xp = jnp.pad(xp, ((0, 0), (0, 0), (0, Np_pad - Np)))
    n_tiles = Np_pad // TN

    w2d = params["proj_w"].reshape(E, K)
    b = params["proj_b"].reshape(E, 1)
    g = params["ln_g"].reshape(E, 1)
    beta = params["ln_b"].reshape(E, 1)

    out = pl.pallas_call(
        patch_embed_kernel,
        grid=(B, n_tiles),
        in_specs=[
            pl.BlockSpec((None, K, TN), lambda b_, t: (b_, 0, t)),
            pl.BlockSpec((E, K), lambda b_, t: (0, 0)),
            pl.BlockSpec((E, 1), lambda b_, t: (0, 0)),
            pl.BlockSpec((E, 1), lambda b_, t: (0, 0)),
            pl.BlockSpec((E, 1), lambda b_, t: (0, 0)),
        ],
        out_specs=pl.BlockSpec((None, E, TN), lambda b_, t: (b_, 0, t)),
        out_shape=jax.ShapeDtypeStruct((B, E, Np_pad), jnp.float32),
        compiler_params=pltpu.CompilerParams(
            dimension_semantics=("parallel", "parallel"),
            vmem_limit_bytes=64 * 1024 * 1024,
        ),
    )(xp, w2d, b, g, beta)

    # Output is already channels-first; only a reshape is needed (no transpose).
    return out[:, :, :Np].reshape(B, E, Dn, Hn, Wn)


# ----------------------------------------------------------------------------
# Pure-JAX reference (strided Conv3d + LayerNorm, NCDHW like the PyTorch module).
# ----------------------------------------------------------------------------
def ref_forward(params, x, patch_size):
    pd, ph, pw = patch_size
    B, Cin, D, H, W = x.shape
    pad_d, pad_h, pad_w = (-D) % pd, (-H) % ph, (-W) % pw
    if pad_d or pad_h or pad_w:
        x = jnp.pad(x, ((0, 0), (0, 0), (0, pad_d), (0, pad_h), (0, pad_w)))
    y = jax.lax.conv_general_dilated(
        x, params["proj_w"], window_strides=(pd, ph, pw), padding="VALID",
        dimension_numbers=("NCDHW", "OIDHW", "NCDHW"),
        precision=jax.lax.Precision.HIGHEST)
    y = y + params["proj_b"].reshape(1, -1, 1, 1, 1)
    yt = jnp.moveaxis(y, 1, -1)                              # b d h w c
    m = jnp.mean(yt, axis=-1, keepdims=True)
    v = jnp.mean((yt - m) ** 2, axis=-1, keepdims=True)
    yt = (yt - m) / jnp.sqrt(v + 1e-5) * params["ln_g"] + params["ln_b"]
    return jnp.moveaxis(yt, -1, 1)                           # b c d h w


# ----------------------------------------------------------------------------
# Deterministic parameter init (Conv3d-style uniform; non-trivial LN affine so
# the affine path is actually exercised by the correctness check).
# ----------------------------------------------------------------------------
def init_params(key, in_channels, embed_dim, patch_size):
    pd, ph, pw = patch_size
    fan_in = in_channels * pd * ph * pw
    bound = 1.0 / math.sqrt(fan_in)
    k1, k2, k3, k4 = jax.random.split(key, 4)
    return {
        "proj_w": jax.random.uniform(k1, (embed_dim, in_channels, pd, ph, pw),
                                     jnp.float32, -bound, bound),
        "proj_b": jax.random.uniform(k2, (embed_dim,), jnp.float32, -bound, bound),
        "ln_g": 1.0 + 0.1 * jax.random.normal(k3, (embed_dim,), jnp.float32),
        "ln_b": 0.1 * jax.random.normal(k4, (embed_dim,), jnp.float32),
    }


if __name__ == "__main__":
    patch_size = (2, 2, 2)
    # D and W are NOT multiples of the patch size -> exercises the boundary-pad path.
    B, Cin, D, H, W = 2, 4, 15, 16, 13
    embed_dim = 32

    key = jax.random.PRNGKey(0)
    kx, kp = jax.random.split(key)
    x = jax.random.normal(kx, (B, Cin, D, H, W), jnp.float32)
    params = init_params(kp, Cin, embed_dim, patch_size)

    fwd = jax.jit(lambda p, xx: patch_embedding_forward(p, xx, patch_size))
    out = jax.block_until_ready(fwd(params, x))

    ref = ref_forward(params, x, patch_size)
    np.testing.assert_allclose(np.asarray(out), np.asarray(ref),
                               atol=1e-4, rtol=1e-4)
    print("KERNEL_OK")
</pallas_src>

<mosaic_0001>
module attributes {stable_mosaic.version = 11 : i64} {
  func.func @patch_embed_kernel(%arg0: i32, %arg1: i32, %arg2: memref<1x32x512xf32, #tpu.memory_space<vmem>>, %arg3: memref<32x32xf32, #tpu.memory_space<vmem>>, %arg4: memref<32x1xf32, #tpu.memory_space<vmem>>, %arg5: memref<32x1xf32, #tpu.memory_space<vmem>>, %arg6: memref<32x1xf32, #tpu.memory_space<vmem>>, %arg7: memref<1x32x512xf32, #tpu.memory_space<vmem>>) attributes {dimension_semantics = [#tpu.dimension_semantics<parallel>, #tpu.dimension_semantics<parallel>], iteration_bounds = array<i64: 2, 1>, scalar_prefetch = 0 : i64, scratch_operands = 0 : i64, tpu.core_type = #tpu.core_type<tc>, window_params = [{transform_indices = @transform_0, window_bounds = array<i64: 1, 32, 512>}, {pipeline_mode = #tpu.pipeline_mode<synchronous>, transform_indices = @transform_1, window_bounds = array<i64: 32, 32>}, {pipeline_mode = #tpu.pipeline_mode<synchronous>, transform_indices = @transform_2, window_bounds = array<i64: 32, 1>}, {pipeline_mode = #tpu.pipeline_mode<synchronous>, transform_indices = @transform_3, window_bounds = array<i64: 32, 1>}, {pipeline_mode = #tpu.pipeline_mode<synchronous>, transform_indices = @transform_4, window_bounds = array<i64: 32, 1>}, {transform_indices = @transform_5, window_bounds = array<i64: 1, 32, 512>}]} {
    %c0 = arith.constant 0 : index
    %c0_0 = arith.constant 0 : index
    %0 = vector.load %arg3[%c0, %c0_0] : memref<32x32xf32, #tpu.memory_space<vmem>>, vector<32x32xf32>
    %c0_1 = arith.constant 0 : index
    %c0_2 = arith.constant 0 : index
    %c0_3 = arith.constant 0 : index
    %1 = vector.load %arg2[%c0_1, %c0_2, %c0_3] : memref<1x32x512xf32, #tpu.memory_space<vmem>>, vector<1x32x512xf32>
    %2 = vector.shape_cast %1 : vector<1x32x512xf32> to vector<32x512xf32>
    %cst = arith.constant dense<0.000000e+00> : vector<32x512xf32>
    %3 = tpu.matmul %0, %2, %cst {dimension_numbers = #tpu.dot_dimension_numbers<[1], [0], [0], [1], [0, 0, 1, 1], [], []>} : vector<32x32xf32>, vector<32x512xf32>, vector<32x512xf32> -> vector<32x512xf32>
    %c0_4 = arith.constant 0 : index
    %c0_5 = arith.constant 0 : index
    %4 = vector.load %arg4[%c0_4, %c0_5] : memref<32x1xf32, #tpu.memory_space<vmem>>, vector<32x1xf32>
    %5 = vector.broadcast %4 : vector<32x1xf32> to vector<32x512xf32>
    %6 = arith.addf %3, %5 : vector<32x512xf32>
    %cst_6 = arith.constant dense<0.000000e+00> : vector<512xf32>
    %7 = vector.multi_reduction <add>, %6, %cst_6 [0] : vector<32x512xf32> to vector<512xf32>
    %8 = vector.shape_cast %7 : vector<512xf32> to vector<1x512xf32>
    %cst_7 = arith.constant 3.200000e+01 : f32
    %9 = vector.broadcast %cst_7 : f32 to vector<1x512xf32>
    %10 = arith.divf %8, %9 : vector<1x512xf32>
    %11 = vector.broadcast %10 : vector<1x512xf32> to vector<32x512xf32>
    %12 = arith.subf %6, %11 : vector<32x512xf32>
    %13 = arith.mulf %12, %12 : vector<32x512xf32>
    %cst_8 = arith.constant dense<0.000000e+00> : vector<512xf32>
    %14 = vector.multi_reduction <add>, %13, %cst_8 [0] : vector<32x512xf32> to vector<512xf32>
    %15 = vector.shape_cast %14 : vector<512xf32> to vector<1x512xf32>
    %cst_9 = arith.constant 3.200000e+01 : f32
    %16 = vector.broadcast %cst_9 : f32 to vector<1x512xf32>
    %17 = arith.divf %15, %16 : vector<1x512xf32>
    %cst_10 = arith.constant 9.99999974E-6 : f32
    %18 = vector.broadcast %cst_10 : f32 to vector<1x512xf32>
    %19 = arith.addf %17, %18 : vector<1x512xf32>
    %20 = math.rsqrt %19 : vector<1x512xf32>
    %21 = vector.broadcast %20 : vector<1x512xf32> to vector<32x512xf32>
    %22 = arith.mulf %12, %21 : vector<32x512xf32>
    %c0_11 = arith.constant 0 : index
    %c0_12 = arith.constant 0 : index
    %23 = vector.load %arg5[%c0_11, %c0_12] : memref<32x1xf32, #tpu.memory_space<vmem>>, vector<32x1xf32>
    %24 = vector.broadcast %23 : vector<32x1xf32> to vector<32x512xf32>
    %25 = arith.mulf %22, %24 : vector<32x512xf32>
    %c0_13 = arith.constant 0 : index
    %c0_14 = arith.constant 0 : index
    %26 = vector.load %arg6[%c0_13, %c0_14] : memref<32x1xf32, #tpu.memory_space<vmem>>, vector<32x1xf32>
    %27 = vector.broadcast %26 : vector<32x1xf32> to vector<32x512xf32>
    %28 = arith.addf %25, %27 : vector<32x512xf32>
    %c0_15 = arith.constant 0 : index
    %c0_16 = arith.constant 0 : index
    %c0_17 = arith.constant 0 : index
    %29 = vector.load %arg7[%c0_15, %c0_16, %c0_17] : memref<1x32x512xf32, #tpu.memory_space<vmem>>, vector<1x32x512xf32>
    %30 = vector.shape_cast %29 : vector<1x32x512xf32> to vector<32x512xf32>
    %31 = vector.shape_cast %28 : vector<32x512xf32> to vector<1x32x512xf32>
    tpu.vector_store %arg7[%c0_15, %c0_16, %c0_17], %31 {strides = array<i32>} : memref<1x32x512xf32, #tpu.memory_space<vmem>>, vector<1x32x512xf32>,
    return
  }
  func.func @transform_0(%arg0: i32, %arg1: i32) -> (i32, i32, i32) {
    %c0_i32 = arith.constant 0 : i32
    %c0_i32_0 = arith.constant 0 : i32
    return %arg0, %c0_i32, %arg1 : i32, i32, i32
  }
  func.func @transform_1(%arg0: i32, %arg1: i32) -> (i32, i32) {
    %c0_i32 = arith.constant 0 : i32
    %c0_i32_0 = arith.constant 0 : i32
    %c0_i32_1 = arith.constant 0 : i32
    return %c0_i32, %c0_i32_0 : i32, i32
  }
  func.func @transform_2(%arg0: i32, %arg1: i32) -> (i32, i32) {
    %c0_i32 = arith.constant 0 : i32
    %c0_i32_0 = arith.constant 0 : i32
    %c0_i32_1 = arith.constant 0 : i32
    return %c0_i32, %c0_i32_0 : i32, i32
  }
  func.func @transform_3(%arg0: i32, %arg1: i32) -> (i32, i32) {
    %c0_i32 = arith.constant 0 : i32
    %c0_i32_0 = arith.constant 0 : i32
    %c0_i32_1 = arith.constant 0 : i32
    return %c0_i32, %c0_i32_0 : i32, i32
  }
  func.func @transform_4(%arg0: i32, %arg1: i32) -> (i32, i32) {
    %c0_i32 = arith.constant 0 : i32
    %c0_i32_0 = arith.constant 0 : i32
    %c0_i32_1 = arith.constant 0 : i32
    return %c0_i32, %c0_i32_0 : i32, i32
  }
  func.func @transform_5(%arg0: i32, %arg1: i32) -> (i32, i32, i32) {
    %c0_i32 = arith.constant 0 : i32
    %c0_i32_0 = arith.constant 0 : i32
    return %arg0, %c0_i32, %arg1 : i32, i32, i32
  }
}

</mosaic_0001>

<bundles_post_ra>
// kernel: _lambda_.1
= control target key start
LH: loop header
LB: loop body
LE: loop exit
PB: predicated region body
PF: predicated region fallthrough
CT: control target
= control target key end

     0   :  { %10 = vsyncpa [#allocation3], 0  ;;  %s1905_s0 = inlined_call_operand.hbm [shape: f32[2,32,512], index: 0, kind: input, shape index: {}]   ;;  %s1906_s1 = inlined_call_operand.hbm [shape: f32[32,32], index: 1, kind: input, shape index: {}]   ;;  %s1907_s2 = inlined_call_operand.hbm [shape: f32[32,1], index: 2, kind: input, shape index: {}]   ;;  %s1908_s3 = inlined_call_operand.hbm [shape: f32[32,1], index: 3, kind: input, shape index: {}]   ;;  %s1909_s4 = inlined_call_operand.hbm [shape: f32[32,1], index: 4, kind: input, shape index: {}]   ;;  %s1910_s5 = inlined_call_operand.hbm [shape: f32[2,32,512], index: 5, kind: output, shape index: {}]  }
   0x1   :  { %12 = vsyncpa [#allocation3 + $0x1], 0 }
   0x2   :  { %13 = vsyncpa [#allocation6], 0 }
   0x3   :  { %14 = vsyncpa [#allocation9], 0 }
   0x4   :  { %15 = vsyncpa [#allocation4], 0 }
   0x5   :  { %17 = vsyncpa [#allocation4 + $0x1], 0  ;;  %s1378_s18 = smov 0   ;;  %s1380_s19 = smov 0  }
   0x6   :  { %s1382_s20 = smov 0   ;;  %s1384_s21 = smov 0  }
   0x7   :  { %s1386_s22 = smov 0   ;;  %s1388_s23 = smov 0  }
   0x8 LB: > { %1917 = sst [smem:[#allocation16_spill]] %s1312_s18  ;;  %s930_s24 = sadd.s32 4294967295, %s1332_s23   ;;  %s1332_s23 = sphi %s1388_s23, %s23_s23   ;;  %s1328_s22 = sphi %s1386_s22, %s1940_s22   ;;  %s1324_s21 = sphi %s1384_s21, %s1939_s21   ;;  %s1320_s20 = sphi %s1382_s20, %s1938_s20   ;;  %s1316_s19 = sphi %s1380_s19, %s1937_s19   ;;  %s1312_s18 = sphi %s1378_s18, %s1936_s18  }
   0x9   : > { %s931_s25 = sadd.s32 4294967294, %s1332_s23   ;;  %p57_p0 = scmp.ne.s32.totalorder %s1316_s19, %s1312_s18 }
   0xa   : > { %p1412_p1 = scmp.eq.s32.totalorder %s930_s24, 0  ;;  %p1416_p2 = scmp.eq.s32.totalorder %s930_s24, 1 }
   0xb   : > { %p173_p3 = scmp.eq.s32.totalorder %s931_s25, 1  ;;  %p932_p5 = scmp.ge.s32.totalorder %s1332_s23, 1 }
   0xc   : > { %s1918_s26 = scalar_select %p1412_p1, 1, 0 }
   0xd   : > { %s1919_s27 = scalar_select %p1416_p2, 1, 0 }
   0xe   : > { %p1422_p4 = por %p1412_p1, %p57_p0  ;;  %p1427_p6 = por %p173_p3, %p57_p0 }
   0xf   : > { %p180_p7 = scmp.lt.s32.totalorder %s1332_s23, 3  ;;  %s1334_s6 = smov [#allocation5]  }
  0x10   : > { %s1920_s28 = scalar_select %p1422_p4, 1, 0 }
  0x11   : > { %s1921_s29 = scalar_select %p1427_p6, 1, 0 }
  0x12   : > { %p1432_p8 = pnand %p932_p5, %p180_p7  ;;  %s192_s7 = sshll.u32 %s1334_s6, 4  ;;  %s1436_s7 = int_to_ptr.vmem [resolvable:$true] %s192_s7 }
  0x13   : > { %1922 = sst [smem:[#allocation17_spill]] %s1921_s29  ;;  %s1335_s9 = smov [#allocation8]  }
  0x14   : > { %s1923_s30 = scalar_select %p1432_p8, 1, 0 }
  0x15   : > { %p999_p9 = pneg %p1432_p8  ;;  %s218_s10 = sshll.u32 %s1335_s9, 4  ;;  %s1447_s10 = int_to_ptr.vmem [resolvable:$true] %s218_s10 }
  0x16   : > { %s1336_s11 = smov [#allocation7]   ;;  %s1100_s15 = scalar_lea.hbm %s1906_s1, 512 }
  0x17   : > { %p1443_p11 = pnand %p999_p9, %p1412_p1  ;;  %s1449_s12 = sshll.u32 %s1336_s11, 4  ;;  %s206_s12 = int_to_ptr.vmem [resolvable:$true] %s1449_s12 }
  0x18   : > { %p1101_p12 = scmp.ne.s32.totalorder %s1906_s1, %s1100_s15  ;;  %p1107_p5 = scmp.lt.u32.totalorder %s1100_s15, %s1906_s1 }
  0x19   : > { %p1459_p13 = pneg %p1443_p11 }
  0x1b   : > { %p1103_p0 = pnand %p1459_p13, %p1101_p12 }
  0x1d   : > { %p1104_p3 = pneg %p1103_p0 }
  0x1f   : > { %p1109_p7 = pnand %p1107_p5, %p1104_p3 }
  0x21   : > { %1112 = shalt.err (!%p1109_p7)
}
  0x22   : > { %s1113_s9 = scalar_lea.vmem %s1436_s7, 512  ;;  %p1121_p1 = scmp.lt.s32.totalorder %s1436_s7, %s1436_s7 }
  0x23   : > { %p1114_p9 = scmp.ne.s32.totalorder %s1436_s7, %s1113_s9  ;;  %p1122_p4 = scmp.lt.s32.totalorder %s1113_s9, %s1113_s9 }
  0x25   : > { %p1116_p10 = pnand %p1114_p9, %p1459_p13  ;;  %p1123_p12 = por %p1122_p4, %p1121_p1 }
  0x27   : > { %p1117_p6 = pneg %p1116_p10 }
  0x29   : > { %p1124_p0 = pnand %p1123_p12, %p1117_p6 }
  0x2b   : > { %1127 = shalt.err (!%p1124_p0)
}
  0x2c   : > { %s1337_s11 = smov 128   ;;  %s1338_s13 = smov 8  }
  0x2d   : > { %1002 = dma.hbm_to_vmem [thread:$0]  (!%p1443_p11), %s1906_s1, 512, %s1436_s7, [#allocation6], %s1337_s11, %s1337_s11, %s1338_s13  }
  0x2e   : > { %s1128_s25 = scalar_lea.hbm %s1908_s3, 512 }
  0x2f   : > { %p1129_p1 = scmp.ne.s32.totalorder %s1908_s3, %s1128_s25  ;;  %p1135_p10 = scmp.lt.u32.totalorder %s1128_s25, %s1908_s3 }
  0x31   : > { %p1131_p4 = pnand %p1129_p1, %p1459_p13 }
  0x33   : > { %p1132_p6 = pneg %p1131_p4 }
  0x35   : > { %p1137_p3 = pnand %p1135_p10, %p1132_p6 }
  0x37   : > { %1140 = shalt.err (!%p1137_p3)
}
  0x38   : > { %s1141_s7 = scalar_lea.vmem %s1447_s10, 512  ;;  %p1149_p12 = scmp.lt.s32.totalorder %s1447_s10, %s1447_s10 }
  0x39   : > { %p1142_p5 = scmp.ne.s32.totalorder %s1447_s10, %s1141_s7  ;;  %p1150_p0 = scmp.lt.s32.totalorder %s1141_s7, %s1141_s7 }
  0x3b   : > { %p1144_p7 = pnand %p1142_p5, %p1459_p13  ;;  %p1151_p1 = por %p1150_p0, %p1149_p12 }
  0x3d   : > { %p1145_p9 = pneg %p1144_p7 }
  0x3f   : > { %p1152_p4 = pnand %p1151_p1, %p1145_p9 }
  0x41   : > { %1155 = shalt.err (!%p1152_p4)
}
  0x42   : > { %1008 = dma.hbm_to_vmem [thread:$0]  (!%p1443_p11), %s1908_s3, 512, %s1447_s10, [#allocation9], %s1337_s11, %s1337_s11, %s1338_s13  }
  0x43   : > { %s1156_s16 = scalar_lea.hbm %s1907_s2, 512 }
  0x44   : > { %p1157_p6 = scmp.ne.s32.totalorder %s1907_s2, %s1156_s16  ;;  %p1163_p5 = scmp.lt.u32.totalorder %s1156_s16, %s1907_s2 }
  0x46   : > { %p1159_p10 = pnand %p1157_p6, %p1459_p13 }
  0x48   : > { %p1160_p3 = pneg %p1159_p10 }
  0x4a   : > { %p1165_p7 = pnand %p1163_p5, %p1160_p3 }
  0x4c   : > { %1168 = shalt.err (!%p1165_p7)
}
  0x4d   : > { %s1169_s7 = scalar_lea.vmem %s206_s12, 512  ;;  %p1177_p1 = scmp.lt.s32.totalorder %s206_s12, %s206_s12 }
  0x4e   : > { %p1170_p9 = scmp.ne.s32.totalorder %s206_s12, %s1169_s7  ;;  %p1178_p4 = scmp.lt.s32.totalorder %s1169_s7, %s1169_s7 }
  0x50   : > { %p1172_p12 = pnand %p1170_p9, %p1459_p13  ;;  %p1179_p8 = por %p1178_p4, %p1177_p1 }
  0x52   : > { %p1173_p0 = pneg %p1172_p12 }
  0x54   : > { %p1180_p2 = pnand %p1179_p8, %p1173_p0 }
  0x56   : > { %1183 = shalt.err (!%p1180_p2)
}
  0x57   : > { %1005 = dma.hbm_to_vmem [thread:$0]  (!%p1443_p11), %s1907_s2, 512, %s206_s12, [#allocation6], %s1337_s11, %s1337_s11, %s1338_s13  }
  0x58   : > { %s1339_s29 = smov [#allocation10]   ;;  %s1184_s17 = scalar_lea.hbm %s1909_s4, 512 }
  0x59   : > { %s231_s14 = sshll.u32 %s1339_s29, 4  ;;  %p1185_p2 = scmp.ne.s32.totalorder %s1909_s4, %s1184_s17  ;;  %s232_s14 = int_to_ptr.vmem [resolvable:$true] %s231_s14 }
  0x5a   : > { %p1191_p10 = scmp.lt.u32.totalorder %s1184_s17, %s1909_s4 }
  0x5b   : > { %p1187_p8 = pnand %p1185_p2, %p1459_p13 }
  0x5d   : > { %p1188_p6 = pneg %p1187_p8 }
  0x5f   : > { %p1193_p3 = pnand %p1191_p10, %p1188_p6 }
  0x61   : > { %1196 = shalt.err (!%p1193_p3)
}
  0x62   : > { %s1197_s12 = scalar_lea.vmem %s232_s14, 512  ;;  %p1205_p12 = scmp.lt.s32.totalorder %s232_s14, %s232_s14 }
  0x63   : > { %p1198_p5 = scmp.ne.s32.totalorder %s232_s14, %s1197_s12  ;;  %p1206_p0 = scmp.lt.s32.totalorder %s1197_s12, %s1197_s12 }
  0x65   : > { %p1200_p7 = pnand %p1198_p5, %p1459_p13  ;;  %p1207_p1 = por %p1206_p0, %p1205_p12 }
  0x67   : > { %p1201_p9 = pneg %p1200_p7 }
  0x69   : > { %p1208_p4 = pnand %p1207_p1, %p1201_p9 }
  0x6b   : > { %1211 = shalt.err (!%p1208_p4)
}
  0x6c   : > { %1011 = dma.hbm_to_vmem [thread:$0]  (!%p1443_p11), %s1909_s4, 512, %s232_s14, [#allocation9], %s1337_s11, %s1337_s11, %s1338_s13  }
  0x6d   : > { %s35_s24 = sadd.s32 1, %s1328_s22  ;;  %s44_s8 = sadd.s32 1, %s1320_s20 }
  0x6e   : > { %p37_p13 = scmp.ge.s32.totalorder %s35_s24, 2  ;;  %p51_p2 = scmp.ne.s32.totalorder %s1320_s20, %s1316_s19 }
  0x6f   : > { %p52_p8 = scmp.eq.s32.totalorder %s1332_s23, 0  ;;  %p1024_p6 = scmp.lt.s32.totalorder %s1332_s23, 2 }
  0x70   : > { %s1942_s24 = smov (%p37_p13, %s35_s24), 0  ;;  %p1926_p3 = scmp.ne.s32.totalorder %s1919_s27, 0 }
  0x71   : > { %p53_p10 = por %p52_p8, %p51_p2  ;;  %s39_s15 = ssub.s32 %s1328_s22, %s1942_s24 }
  0x72   : > { %p1562_p5 = por %p1926_p3, %p51_p2  ;;  %s245_s16 = sand.u32 1, %s1320_s20  }
  0x73   : > { %p42_p7 = scmp.eq.s32.totalorder %s39_s15, 0  ;;  %s938_s11 = sshll.u32 %s245_s16, 7 }
  0x74   : > { %s961_s13 = sshll.u32 %s1328_s22, 11  ;;  %s249_s27 = scalar_lea.vmem [#allocation2], %s938_s11 }
  0x75   : > { %s1571_s14 = scalar_select %p42_p7, %s1320_s20, %s44_s8  }
  0x76   : > { %s1576_s6 = scalar_lea.hbm %s1905_s0, %s961_s13  ;;  %s258_s9 = sshll.u32 %s249_s27, 4  ;;  %s1584_s9 = int_to_ptr.vmem [resolvable:$true] %s258_s9 }
  0x77   : > { %p1580_p11 = pnand %p1024_p6, %p53_p10  ;;  %s1586_s12 = scalar_lea.sflag [#allocation3], %s245_s16 }
  0x78   : > { %s1212_s10 = scalar_lea.hbm %s1576_s6, 2048  ;;  %s1217_s15 = scalar_lea.hbm %s1905_s0, 4096 }
  0x79   : > { %p1213_p9 = scmp.ne.s32.totalorder %s1576_s6, %s1212_s10  ;;  %p1214_p12 = pneg %p1580_p11 }
  0x7a   : > { %p1218_p4 = scmp.lt.u32.totalorder %s1576_s6, %s1905_s0  ;;  %p1219_p13 = scmp.lt.u32.totalorder %s1217_s15, %s1212_s10 }
  0x7b   : > { %p1215_p0 = pnand %p1214_p12, %p1213_p9  ;;  %p1221_p8 = scmp.lt.u32.totalorder %s1212_s10, %s1576_s6 }
  0x7c   : > { %p1220_p2 = por %p1219_p13, %p1218_p4 }
  0x7d   : > { %p1216_p1 = pneg %p1215_p0 }
  0x7e   : > { %p1222_p6 = por %p1221_p8, %p1220_p2 }
  0x80   : > { %p1223_p10 = pnand %p1222_p6, %p1216_p1 }
  0x82   : > { %1226 = shalt.err (!%p1223_p10)
}
  0x83   : > { %s1227_s16 = scalar_lea.vmem %s1584_s9, 2048  ;;  %s1340_s17 = smov [#allocation2]  }
  0x84   : > { %p1228_p3 = scmp.ne.s32.totalorder %s1584_s9, %s1227_s16  ;;  %s1232_s25 = sshll.u32 %s1340_s17, 4  ;;  %s1233_s25 = int_to_ptr.vmem [resolvable:$false] %s1232_s25 }
  0x85   : > { %s1234_s27 = scalar_lea.vmem %s1233_s25, 4096  ;;  %p1235_p0 = scmp.lt.s32.totalorder %s1584_s9, %s1233_s25 }
  0x86   : > { %p1230_p7 = pnand %p1228_p3, %p1214_p12  ;;  %p1236_p4 = scmp.lt.s32.totalorder %s1234_s27, %s1227_s16 }
  0x88   : > { %p1231_p9 = pneg %p1230_p7  ;;  %p1237_p13 = por %p1236_p4, %p1235_p0 }
  0x8a   : > { %p1238_p2 = pnand %p1237_p13, %p1231_p9 }
  0x8c   : > { %1241 = shalt.err (!%p1238_p2)
}
  0x8d   : > { %s1341_s10 = smov 512   ;;  %s1342_s18 = smov 32  }
  0x8e   : > { %1015 = dma.hbm_to_vmem [thread:$0]  (!%p1580_p11), %s1576_s6, 2048, %s1584_s9, %s1586_s12, %s1341_s10, %s1341_s10, %s1342_s18  }
  0x8f   : > { %p1929_p12 = scmp.ne.s32.totalorder %s1923_s30, 0 }
  0x90   : > { %s1617_s8 = sand.u32 (!%p1929_p12), 1, %s1316_s19   ;;  %p1930_p1 = scmp.ne.s32.totalorder (!%p1929_p12), %s1920_s28, 0 }
  0x91   : > { %270 = sbr.rel (%p1929_p12) target bundleno = 480 (0x1e0), region = 40  ;;  %s942_s15 = sshll.u32 (!%p1929_p12), %s1617_s8, 7 }
  0x92   : > { %s273_s11 = scalar_lea.sflag (!%p1929_p12), [#allocation3], %s1617_s8  ;;  %s1623_s13 = scalar_lea.vmem (!%p1929_p12), [#allocation2], %s942_s15 }
  0x98   : > { %1295 = dma.done.wait (%p1930_p1), %s273_s11, 2048  }
  0x99   : > { %1297 = vsyncadd (%p1930_p1), %s273_s11, 4294965248  ;;  %p1931_p11 = scmp.ne.s32.totalorder %s1918_s26, 0 }
  0x9b   : > { %1299 = dma.done.wait (%p1931_p11), [#allocation6], 1024  }
  0x9c   : > { %1301 = vsyncadd (%p1931_p11), [#allocation6], 4294966272 }
  0x9d   : > { %1303 = dma.done.wait (%p1931_p11), [#allocation9], 1024  }
  0x9e   : > { %1305 = vsyncadd (%p1931_p11), [#allocation9], 4294966272  ;;  %v1343_v0 = vmov 0.0   ;;  %v1344_v1 = vmov 0   ;;  %v326_v2 = vld [vmem:[%s1623_s13 + $0x8] sm:$0xff]  ;;  %v328_v4 = vld [vmem:[%s1623_s13 + $0x18] sm:$0xff] }
  0x9f   : > { %442 = vmatprep.mubr.f32.mxu0 %v1343_v0  ;;  %531 = vmatprep.mubr.f32.mxu1 %v1343_v0  ;;  %v330_v3 = vld [vmem:[%s1623_s13 + $0x28] sm:$0xff]  ;;  %v332_v6 = vld [vmem:[%s1623_s13 + $0x38] sm:$0xff]  ;;  %v325_v7 = vld [vmem:[%s1623_s13] sm:$0xff]  ;;  %vm365_vm0 = vcmask 261120   ;;  %s1811_s26 = scalar_lea.vmem [#allocation11], %s942_s15  ;;  %s962_s28 = sshll.u32 %s1324_s21, 11 }
  0xa0   : > { %1090 = vset.pattern.permute.xlu0 %v1344_v1  ;;  %1091 = vset.pattern.permute.xlu1 %v1344_v1  ;;  %v963_v5 = vpack.c.bf16 %v330_v3, %v326_v2  ;;  %v329_v8 = vld [vmem:[%s1623_s13 + $0x20] sm:$0xff]  ;;  %v971_v9 = vpack.c.bf16 %v332_v6, %v328_v4  ;;  %v327_v11 = vld [vmem:[%s1623_s13 + $0x10] sm:$0xff]  ;;  %v334_v13 = vld [vmem:[%s1623_s13 + $0x48] sm:$0xff]  ;;  %s805_s30 = sshll.u32 %s1811_s26, 4  ;;  %s1844_s9 = scalar_lea.hbm %s1910_s5, %s962_s28  ;;  %s1846_s30 = int_to_ptr.vmem [resolvable:$true] %s805_s30 }
  0xa1   : > { %v965_v10 = vpack.c.bf16 %v329_v8, %v325_v7  ;;  %v331_v12 = vld [vmem:[%s1623_s13 + $0x30] sm:$0xff]  ;;  %v338_v15 = vld [vmem:[%s1623_s13 + $0x68] sm:$0xff]  ;;  %v336_v16 = vld [vmem:[%s1623_s13 + $0x58] sm:$0xff]  ;;  %s790_s7 = scalar_lea.sflag [#allocation4], %s1617_s8  ;;  %s1242_s12 = scalar_lea.vmem %s1846_s30, 2048 }
  0xa2   : > { %964 = vmatprep.subr.bf16.mxu0 %v963_v5  ;;  %v973_v14 = vpack.c.bf16 %v331_v12, %v327_v11  ;;  %v340_v17 = vld [vmem:[%s1623_s13 + $0x78] sm:$0xff]  ;;  %972 = vmatprep.subr.bf16.mxu1 %v971_v9  ;;  %v967_v18 = vpack.c.bf16 %v338_v15, %v334_v13  ;;  %v333_v20 = vld [vmem:[%s1623_s13 + $0x40] sm:$0xff]  ;;  %v335_v22 = vld [vmem:[%s1623_s13 + $0x50] sm:$0xff]  ;;  %p1243_p8 = scmp.ne.s32.totalorder %s1846_s30, %s1242_s12  ;;  %s1345_s16 = smov [#allocation11]  }
  0xa3   : > { %966 = vmatpush1.bf16.msra.mxu0 %v965_v10  ;;  %v975_v19 = vpack.c.bf16 %v340_v17, %v336_v16  ;;  %v337_v21 = vld [vmem:[%s1623_s13 + $0x60] sm:$0xff]  ;;  %v339_v24 = vld [vmem:[%s1623_s13 + $0x70] sm:$0xff]  ;;  %v342_v29 = vld [vmem:[#allocation7 + $0x8] sm:$0xff]  ;;  %s1246_s17 = sshll.u32 %s1345_s16, 4  ;;  %s1247_s17 = int_to_ptr.vmem [resolvable:$false] %s1246_s17 }
  0xa4   : > { %974 = vmatpush1.bf16.msra.mxu1 %v973_v14  ;;  %v969_v23 = vpack.c.bf16 %v337_v21, %v333_v20  ;;  %968 = vmatprep.subr.bf16.mxu0 %v967_v18  ;;  %v977_v25 = vpack.c.bf16 %v339_v24, %v335_v22  ;;  %v341_v26 = vld [vmem:[#allocation7] sm:$0xff]  ;;  %v343_v27 = vld [vmem:[#allocation7 + $0x10] sm:$0xff]  ;;  %v344_v30 = vld [vmem:[#allocation7 + $0x18] sm:$0xff]  ;;  %p1244_p6 = pnand %p1243_p8, %p1562_p5  ;;  %s1248_s25 = scalar_lea.vmem %s1247_s17, 4096 }
  0xa5   : > { %976 = vmatprep.subr.bf16.mxu1 %v975_v19  ;;  %347 = vperm.xlu0 %1090, %v341_v26   ;;  %v321_v28 = vld [vmem:[#allocation5] sm:$0xff]  ;;  %v322_v31 = vld [vmem:[#allocation5 + $0x8] sm:$0xff]  ;;  %v323_v34 = vld [vmem:[#allocation5 + $0x10] sm:$0xff]  ;;  %p1249_p3 = scmp.lt.s32.totalorder %s1846_s30, %s1247_s17  ;;  %p1250_p7 = scmp.lt.s32.totalorder %s1248_s25, %s1242_s12 }
  0xa6   : > { %357 = vperm.xlu1 %1091, %v343_v27   ;;  %v693_v32 = vld [vmem:[#allocation8] sm:$0xff]  ;;  %v694_v33 = vld [vmem:[#allocation8 + $0x8] sm:$0xff]  ;;  %v695_v35 = vld [vmem:[#allocation8 + $0x10] sm:$0xff]  ;;  %p1245_p10 = pneg %p1244_p6 }
  0xa7   : > { %970 = vmatpush1.bf16.msra.mxu0 %v969_v23  ;;  %v696_v36 = vld [vmem:[#allocation8 + $0x18] sm:$0xff]  ;;  %v733_v38 = vld [vmem:[#allocation10] sm:$0xff]  ;;  %v734_v39 = vld [vmem:[#allocation10 + $0x8] sm:$0xff]  ;;  %p1251_p9 = por %p1250_p7, %p1249_p3 }
  0xa8   : > { %978 = vmatpush1.bf16.msra.mxu1 %v977_v25  ;;  %v324_v37 = vld [vmem:[#allocation5 + $0x18] sm:$0xff]  ;;  %v735_v40 = vld [vmem:[#allocation10 + $0x10] sm:$0xff] }
  0xa9   : > { %352 = vperm.xlu0 %1090, %v342_v29   ;;  %v736_v41 = vld [vmem:[#allocation10 + $0x18] sm:$0xff]  ;;  %p1252_p0 = pnand %p1251_p9, %p1245_p10 }
  0xaa   : > { %948 = vmatmul.mubr.msk.f32.vlgmr.msra.gmra.mrb[0].mxu0 %vm365_vm0, %v321_v28  ;;  %362 = vperm.xlu1 %1091, %v344_v30  }
  0xab   : > { %952 = vmatmul.mubr.msk.f32.vlgmr.msra.gmra.mrb[0].mxu1 %vm365_vm0, %v321_v28  ;;  %448 = vmatprep.mubr.f32.mxu0 %v1343_v0 }
  0xac   : > { %537 = vmatprep.mubr.f32.mxu1 %v1343_v0 }
  0xad   : > { %699 = vperm.xlu0 %1090, %v693_v32  }
  0xae   : > { %949 = vmatmul.mubr.msk.f32.gmra.mrb[2].mxu0 %vm365_vm0, %v322_v31  ;;  %704 = vperm.xlu1 %1091, %v694_v33  }
  0xaf   : > { %953 = vmatmul.mubr.msk.f32.gmra.mrb[2].mxu1 %vm365_vm0, %v322_v31  ;;  %454 = vmatprep.mubr.f32.mxu0 %v1343_v0 }
  0xb0   : > { %543 = vmatprep.mubr.f32.mxu1 %v1343_v0 }
  0xb1   : > { %709 = vperm.xlu0 %1090, %v695_v35  }
  0xb2   : > { %950 = vmatmul.mubr.msk.f32.gmra.mrb[4].mxu0 %vm365_vm0, %v323_v34  ;;  %714 = vperm.xlu1 %1091, %v696_v36  }
  0xb3   : > { %954 = vmatmul.mubr.msk.f32.gmra.mrb[4].mxu1 %vm365_vm0, %v323_v34  ;;  %460 = vmatprep.mubr.f32.mxu0 %v1343_v0 }
  0xb4   : > { %549 = vmatprep.mubr.f32.mxu1 %v1343_v0 }
  0xb5   : > { %739 = vperm.xlu0 %1090, %v733_v38  }
  0xb6   : > { %951 = vmatmul.mubr.msk.f32.gmra.mrb[6].mxu0 %vm365_vm0, %v324_v37  ;;  %744 = vperm.xlu1 %1091, %v734_v39  }
  0xb7   : > { %955 = vmatmul.mubr.msk.f32.gmra.mrb[6].mxu1 %vm365_vm0, %v324_v37 }
  0xb9   : > { %749 = vperm.xlu0 %1090, %v735_v40  }
  0xba   : > { %754 = vperm.xlu1 %1091, %v736_v41  }
 0x124   : > { %v348_v42 = vpop.permute.xlu0 %347 }
 0x125   : > { %v358_v53 = vpop.permute.xlu1 %357 }
 0x128   : > { %v353_v47 = vpop.permute.xlu0 %352 }
 0x129   : > { %v363_v10 = vpop.permute.xlu1 %362 }
 0x17d   : > { %v444_v43 = vpop.f32.mrb[0].mxu0 }
 0x17e   : > { %v533_v44 = vpop.f32.mrb[0].mxu1  ;;  %v446_v45 = vpop.f32.mrb[1].mxu0  ;;  %v1669_v49 = vadd.f32 %v444_v43, %v348_v42 }
 0x17f   : > { %v535_v46 = vpop.f32.mrb[1].mxu1  ;;  %v1673_v54 = vadd.f32 %v533_v44, %v348_v42  ;;  %v1675_v55 = vadd.f32 %v446_v45, %v348_v42 }
 0x180   : > { %v1681_v59 = vadd.f32 %v535_v46, %v348_v42 }
 0x181   : > { %v450_v48 = vpop.f32.mrb[2].mxu0 }
 0x182   : > { %v1671_v50 = vadd.f32 %v450_v48, %v353_v47  ;;  %v539_v51 = vpop.f32.mrb[2].mxu1  ;;  %v452_v52 = vpop.f32.mrb[3].mxu0 }
 0x183   : > { %v1677_v56 = vadd.f32 %v539_v51, %v353_v47  ;;  %v1679_v57 = vadd.f32 %v452_v52, %v353_v47  ;;  %v541_v58 = vpop.f32.mrb[3].mxu1 }
 0x184   : > { %v556_v60 = vadd.f32 %v1671_v50, %v1669_v49  ;;  %v1685_v61 = vadd.f32 %v541_v58, %v353_v47 }
 0x185   : > { %v574_v62 = vadd.f32 %v1677_v56, %v1673_v54  ;;  %v565_v63 = vadd.f32 %v1679_v57, %v1675_v55  ;;  %v456_v0 = vpop.f32.mrb[4].mxu0 }
 0x186   : > { %v583_v1 = vadd.f32 %v1685_v61, %v1681_v59  ;;  %v457_v2 = vadd.f32 %v456_v0, %v358_v53  ;;  %v545_v3 = vpop.f32.mrb[4].mxu1  ;;  %v458_v4 = vpop.f32.mrb[5].mxu0 }
 0x187   : > { %v546_v5 = vadd.f32 %v545_v3, %v358_v53  ;;  %v1693_v6 = vadd.f32 %v458_v4, %v358_v53  ;;  %v547_v7 = vpop.f32.mrb[5].mxu1 }
 0x188   : > { %v557_v8 = vadd.f32 %v556_v60, %v457_v2  ;;  %v1695_v9 = vadd.f32 %v547_v7, %v358_v53 }
 0x189   : > { %v575_v11 = vadd.f32 %v574_v62, %v546_v5  ;;  %v566_v12 = vadd.f32 %v565_v63, %v1693_v6  ;;  %v462_v13 = vpop.f32.mrb[6].mxu0 }
 0x18a   : > { %v584_v14 = vadd.f32 %v583_v1, %v1695_v9  ;;  %v463_v15 = vadd.f32 %v462_v13, %v363_v10  ;;  %v551_v16 = vpop.f32.mrb[6].mxu1  ;;  %v464_v17 = vpop.f32.mrb[7].mxu0 }
 0x18b   : > { %v552_v18 = vadd.f32 %v551_v16, %v363_v10  ;;  %v465_v19 = vadd.f32 %v464_v17, %v363_v10  ;;  %v553_v20 = vpop.f32.mrb[7].mxu1 }
 0x18c   : > { %v558_v21 = vadd.f32 %v557_v8, %v463_v15  ;;  %v1699_v22 = vadd.f32 %v553_v20, %v363_v10 }
 0x18d   : > { %v576_v23 = vadd.f32 %v575_v11, %v552_v18  ;;  %v567_v24 = vadd.f32 %v566_v12, %v465_v19 }
 0x18e   : > { %v559_v25 = vrot.slane %v558_v21, 4  ;;  %v585_v26 = vadd.f32 %v584_v14, %v1699_v22 }
 0x18f   : > { %v577_v27 = vrot.slane %v576_v23, 4  ;;  %v568_v28 = vrot.slane %v567_v24, 4 }
 0x190   : > { %v560_v29 = vadd.f32 %v559_v25, %v558_v21  ;;  %v586_v30 = vrot.slane %v585_v26, 4 }
 0x191   : > { %v578_v31 = vadd.f32 %v577_v27, %v576_v23  ;;  %v569_v32 = vadd.f32 %v568_v28, %v567_v24 }
 0x192   : > { %v561_v33 = vrot.slane %v560_v29, 2  ;;  %v587_v34 = vadd.f32 %v586_v30, %v585_v26 }
 0x193   : > { %v579_v35 = vrot.slane %v578_v31, 2  ;;  %v570_v36 = vrot.slane %v569_v32, 2 }
 0x194   : > { %v562_v37 = vadd.f32 %v561_v33, %v560_v29  ;;  %v588_v38 = vrot.slane %v587_v34, 2 }
 0x195   : > { %v580_v39 = vadd.f32 %v579_v35, %v578_v31  ;;  %v571_v40 = vadd.f32 %v570_v36, %v569_v32 }
 0x196   : > { %v563_v41 = vrot.slane %v562_v37, 1  ;;  %v589_v42 = vadd.f32 %v588_v38, %v587_v34 }
 0x197   : > { %v581_v43 = vrot.slane %v580_v39, 1  ;;  %v572_v44 = vrot.slane %v571_v40, 1 }
 0x198   : > { %v564_v45 = vadd.f32 %v563_v41, %v562_v37  ;;  %v590_v46 = vrot.slane %v589_v42, 1 }
 0x199   : > { %v582_v47 = vadd.f32 %v581_v43, %v580_v39  ;;  %v573_v48 = vadd.f32 %v572_v44, %v571_v40 }
 0x19a   : > { %v593_v51 = vmul.f32 0.03125, %v564_v45  ;;  %v591_v58 = vadd.f32 %v590_v46, %v589_v42 }
 0x19b   : > { %v595_v52 = vmul.f32 0.03125, %v582_v47  ;;  %v594_v53 = vmul.f32 0.03125, %v573_v48 }
 0x19c   : > { %v1703_v60 = vsub.f32 %v1669_v49, %v593_v51  ;;  %v1706_v62 = vsub.f32 %v1671_v50, %v593_v51  ;;  %v1708_v63 = vsub.f32 %v457_v2, %v593_v51  ;;  %v1710_v0 = vsub.f32 %v463_v15, %v593_v51 }
 0x19d   : > { %v1713_v1 = vsub.f32 %v1673_v54, %v595_v52  ;;  %v1716_v3 = vsub.f32 %v1677_v56, %v595_v52  ;;  %v1718_v4 = vsub.f32 %v546_v5, %v595_v52  ;;  %v1720_v7 = vsub.f32 %v552_v18, %v595_v52 }
 0x19e   : > { %v613_v49 = vmul.f32 %v1703_v60, %v1703_v60  ;;  %v617_v50 = vmul.f32 %v1706_v62, %v1706_v62  ;;  %v621_v2 = vmul.f32 %v1708_v63, %v1708_v63  ;;  %v625_v54 = vmul.f32 %v1710_v0, %v1710_v0 }
 0x19f   : > { %v615_v56 = vmul.f32 %v1713_v1, %v1713_v1  ;;  %v619_v5 = vmul.f32 %v1716_v3, %v1716_v3  ;;  %v1735_v10 = vsub.f32 %v1675_v55, %v594_v53  ;;  %v1738_v11 = vsub.f32 %v1679_v57, %v594_v53 }
 0x1a0   : > { %v629_v8 = vadd.f32 %v617_v50, %v613_v49  ;;  %v1741_v12 = vsub.f32 %v1693_v6, %v594_v53  ;;  %v623_v13 = vmul.f32 %v1718_v4, %v1718_v4  ;;  %v1745_v15 = vsub.f32 %v465_v19, %v594_v53  ;;  %v1777_v49 = vpop.permute.xlu0 %699  ;;  %v1779_v50 = vpop.permute.xlu1 %704 }
 0x1a1   : > { %v647_v14 = vadd.f32 %v619_v5, %v615_v56  ;;  %v596_v16 = vmul.f32 0.03125, %v591_v58  ;;  %v627_v18 = vmul.f32 %v1720_v7, %v1720_v7  ;;  %v614_v55 = vmul.f32 %v1735_v10, %v1735_v10 }
 0x1a2   : > { %v630_v17 = vadd.f32 %v629_v8, %v621_v2  ;;  %v618_v57 = vmul.f32 %v1738_v11, %v1738_v11  ;;  %v622_v6 = vmul.f32 %v1741_v12, %v1741_v12 }
 0x1a3   : > { %v648_v20 = vadd.f32 %v647_v14, %v623_v13  ;;  %v1756_v21 = vsub.f32 %v1681_v59, %v596_v16  ;;  %v1759_v19 = vsub.f32 %v1685_v61, %v596_v16  ;;  %v1762_v25 = vsub.f32 %v1695_v9, %v596_v16 }
 0x1a4   : > { %v631_v23 = vadd.f32 %v630_v17, %v625_v54  ;;  %v638_v24 = vadd.f32 %v618_v57, %v614_v55  ;;  %v1765_v26 = vsub.f32 %v1699_v22, %v596_v16  ;;  %v626_v61 = vmul.f32 %v1745_v15, %v1745_v15  ;;  %v1781_v55 = vpop.permute.xlu0 %709  ;;  %v1783_v57 = vpop.permute.xlu1 %714 }
 0x1a5   : > { %v649_v27 = vadd.f32 %v648_v20, %v627_v18  ;;  %v616_v28 = vmul.f32 %v1756_v21, %v1756_v21  ;;  %v620_v29 = vmul.f32 %v1759_v19, %v1759_v19  ;;  %v624_v9 = vmul.f32 %v1762_v25, %v1762_v25 }
 0x1a6   : > { %v632_v59 = vrot.slane %v631_v23, 4  ;;  %v639_v30 = vadd.f32 %v638_v24, %v622_v6  ;;  %v628_v35 = vmul.f32 %v1765_v26, %v1765_v26 }
 0x1a7   : > { %v650_v31 = vrot.slane %v649_v27, 4  ;;  %v656_v32 = vadd.f32 %v620_v29, %v616_v28 }
 0x1a8   : > { %v633_v33 = vadd.f32 %v632_v59, %v631_v23  ;;  %v640_v22 = vadd.f32 %v639_v30, %v626_v61  ;;  %v1785_v24 = vpop.permute.xlu0 %739 }
 0x1a9   : > { %v651_v34 = vadd.f32 %v650_v31, %v649_v27  ;;  %v657_v36 = vadd.f32 %v656_v32, %v624_v9  ;;  %v1787_v27 = vpop.permute.xlu1 %744 }
 0x1aa   : > { %v634_v37 = vrot.slane %v633_v33, 2  ;;  %v641_v38 = vrot.slane %v640_v22, 4 }
 0x1ab   : > { %v652_v39 = vrot.slane %v651_v34, 2  ;;  %v658_v40 = vadd.f32 %v657_v36, %v628_v35 }
 0x1ac   : > { %v635_v41 = vadd.f32 %v634_v37, %v633_v33  ;;  %v642_v42 = vadd.f32 %v641_v38, %v640_v22 }
 0x1ad   : > { %v653_v43 = vadd.f32 %v652_v39, %v651_v34  ;;  %v659_v44 = vrot.slane %v658_v40, 4 }
 0x1ae   : > { %v636_v45 = vrot.slane %v635_v41, 1  ;;  %v643_v46 = vrot.slane %v642_v42, 2 }
 0x1af   : > { %v654_v47 = vrot.slane %v653_v43, 1  ;;  %v660_v48 = vadd.f32 %v659_v44, %v658_v40 }
 0x1b0   : > { %v637_v51 = vadd.f32 %v636_v45, %v635_v41  ;;  %v644_v52 = vadd.f32 %v643_v46, %v642_v42 }
 0x1b1   : > { %v655_v53 = vadd.f32 %v654_v47, %v653_v43  ;;  %v661_v58 = vrot.slane %v660_v48, 2 }
 0x1b2   : > { %v665_v2 = vmul.f32 0.03125, %v637_v51  ;;  %v645_v54 = vrot.slane %v644_v52, 1 }
 0x1b3   : > { %v667_v56 = vmul.f32 0.03125, %v655_v53  ;;  %v662_v5 = vadd.f32 %v661_v58, %v660_v48 }
 0x1b4   : > { %v669_v8 = vadd.f32 1e-05, %v665_v2  ;;  %v646_v13 = vadd.f32 %v645_v54, %v644_v52 }
 0x1b5   : > { %v671_v14 = vadd.f32 1e-05, %v667_v56  ;;  %v663_v16 = vrot.slane %v662_v5, 1 }
 0x1b6   : > { %1092 = vrsqrt.f32 %v669_v8  ;;  %v666_v17 = vmul.f32 0.03125, %v646_v13 }
 0x1b7   : > { %1094 = vrsqrt.f32 %v671_v14  ;;  %v664_v18 = vadd.f32 %v663_v16, %v662_v5 }
 0x1b8   : > { %v670_v20 = vadd.f32 1e-05, %v666_v17 }
 0x1b9   : > { %v668_v6 = vmul.f32 0.03125, %v664_v18 }
 0x1ba   : > { %1096 = vrsqrt.f32 %v670_v20 }
 0x1bb   : > { %v672_v23 = vadd.f32 1e-05, %v668_v6 }
 0x1bd   : > { %1098 = vrsqrt.f32 %v672_v23 }
 0x1c0   : > { %v1093_v28 = vpop.eup %1092 }
 0x1c1   : > { %v1095_v29 = vpop.eup %1094  ;;  %v677_v59 = vmul.f32 %v1093_v28, %v1703_v60  ;;  %v681_v61 = vmul.f32 %v1093_v28, %v1706_v62  ;;  %v685_v30 = vmul.f32 %v1093_v28, %v1708_v63  ;;  %v689_v31 = vmul.f32 %v1093_v28, %v1710_v0  ;;  %v750_v63 = vpop.permute.xlu0 %749 }
 0x1c2   : > { %v679_v9 = vmul.f32 %v1095_v29, %v1713_v1  ;;  %v683_v32 = vmul.f32 %v1095_v29, %v1716_v3  ;;  %v687_v33 = vmul.f32 %v1095_v29, %v1718_v4  ;;  %v691_v22 = vmul.f32 %v1095_v29, %v1720_v7  ;;  %v755_v0 = vpop.permute.xlu1 %754 }
 0x1c3   : > { %v717_v34 = vmul.f32 %v1777_v49, %v677_v59  ;;  %v721_v35 = vmul.f32 %v1779_v50, %v681_v61  ;;  %v725_v60 = vmul.f32 %v1781_v55, %v685_v30  ;;  %v729_v62 = vmul.f32 %v1783_v57, %v689_v31 }
 0x1c4   : > { %v1097_v36 = vpop.eup %1096  ;;  %v719_v1 = vmul.f32 %v1777_v49, %v679_v9  ;;  %v723_v3 = vmul.f32 %v1779_v50, %v683_v32  ;;  %v727_v4 = vmul.f32 %v1781_v55, %v687_v33  ;;  %v731_v7 = vmul.f32 %v1783_v57, %v691_v22 }
 0x1c5   : > { %v757_v37 = vadd.f32 %v1785_v24, %v717_v34  ;;  %v761_v38 = vadd.f32 %v1787_v27, %v721_v35  ;;  %v765_v39 = vadd.f32 %v750_v63, %v725_v60  ;;  %v769_v40 = vadd.f32 %v755_v0, %v729_v62 }
 0x1c6   : > { %v759_v41 = vadd.f32 %v1785_v24, %v719_v1  ;;  %v763_v42 = vadd.f32 %v1787_v27, %v723_v3  ;;  %v767_v43 = vadd.f32 %v750_v63, %v727_v4  ;;  %v771_v44 = vadd.f32 %v755_v0, %v731_v7 }
 0x1c7   : > { %v1099_v45 = vpop.eup %1098  ;;  %773 = vst [vmem:[%s1811_s26] sm:$0xff] %v757_v37  ;;  %777 = vst [vmem:[%s1811_s26 + $0x20] sm:$0xff] %v761_v38  ;;  %v678_v46 = vmul.f32 %v1097_v36, %v1735_v10  ;;  %v682_v47 = vmul.f32 %v1097_v36, %v1738_v11  ;;  %v686_v48 = vmul.f32 %v1097_v36, %v1741_v12 }
 0x1c8   : > { %781 = vst [vmem:[%s1811_s26 + $0x40] sm:$0xff] %v765_v39  ;;  %785 = vst [vmem:[%s1811_s26 + $0x60] sm:$0xff] %v769_v40  ;;  %v690_v51 = vmul.f32 %v1097_v36, %v1745_v15  ;;  %v680_v52 = vmul.f32 %v1099_v45, %v1756_v21  ;;  %v684_v53 = vmul.f32 %v1099_v45, %v1759_v19 }
 0x1c9   : > { %775 = vst [vmem:[%s1811_s26 + $0x10] sm:$0xff] %v759_v41  ;;  %779 = vst [vmem:[%s1811_s26 + $0x30] sm:$0xff] %v763_v42  ;;  %v688_v58 = vmul.f32 %v1099_v45, %v1762_v25  ;;  %v692_v2 = vmul.f32 %v1099_v45, %v1765_v26  ;;  %v718_v10 = vmul.f32 %v1777_v49, %v678_v46 }
 0x1ca   : > { %783 = vst [vmem:[%s1811_s26 + $0x50] sm:$0xff] %v767_v43  ;;  %787 = vst [vmem:[%s1811_s26 + $0x70] sm:$0xff] %v771_v44  ;;  %v722_v11 = vmul.f32 %v1779_v50, %v682_v47  ;;  %v726_v12 = vmul.f32 %v1781_v55, %v686_v48  ;;  %v730_v15 = vmul.f32 %v1783_v57, %v690_v51 }
 0x1cb   : > { %v720_v21 = vmul.f32 %v1777_v49, %v680_v52  ;;  %v724_v19 = vmul.f32 %v1779_v50, %v684_v53  ;;  %v728_v25 = vmul.f32 %v1781_v55, %v688_v58  ;;  %v732_v26 = vmul.f32 %v1783_v57, %v692_v2 }
 0x1cc   : > { %v758_v54 = vadd.f32 %v1785_v24, %v718_v10  ;;  %v762_v56 = vadd.f32 %v1787_v27, %v722_v11  ;;  %v766_v5 = vadd.f32 %v750_v63, %v726_v12  ;;  %v770_v8 = vadd.f32 %v755_v0, %v730_v15 }
 0x1cd   : > { %v760_v49 = vadd.f32 %v1785_v24, %v720_v21  ;;  %v764_v50 = vadd.f32 %v1787_v27, %v724_v19  ;;  %v768_v13 = vadd.f32 %v750_v63, %v728_v25  ;;  %v772_v14 = vadd.f32 %v755_v0, %v732_v26 }
 0x1ce   : > { %774 = vst [vmem:[%s1811_s26 + $0x8] sm:$0xff] %v758_v54  ;;  %778 = vst [vmem:[%s1811_s26 + $0x28] sm:$0xff] %v762_v56 }
 0x1cf   : > { %782 = vst [vmem:[%s1811_s26 + $0x48] sm:$0xff] %v766_v5  ;;  %786 = vst [vmem:[%s1811_s26 + $0x68] sm:$0xff] %v770_v8 }
 0x1d0   : > { %776 = vst [vmem:[%s1811_s26 + $0x18] sm:$0xff] %v760_v49  ;;  %780 = vst [vmem:[%s1811_s26 + $0x38] sm:$0xff] %v764_v50 }
 0x1d1   : > { %784 = vst [vmem:[%s1811_s26 + $0x58] sm:$0xff] %v768_v13  ;;  %788 = vst [vmem:[%s1811_s26 + $0x78] sm:$0xff] %v772_v14 }
 0x1d2   : > { %1255 = shalt.err (!%p1252_p0)
}
 0x1d3   : > { %s1256_s27 = scalar_lea.hbm %s1844_s9, 2048  ;;  %s1260_s15 = scalar_lea.hbm %s1910_s5, 4096 }
 0x1d4   : > { %p1257_p4 = scmp.ne.s32.totalorder %s1844_s9, %s1256_s27  ;;  %p1261_p12 = scmp.lt.u32.totalorder %s1844_s9, %s1910_s5 }
 0x1d5   : > { %p1262_p1 = scmp.lt.u32.totalorder %s1260_s15, %s1256_s27  ;;  %p1264_p8 = scmp.lt.u32.totalorder %s1256_s27, %s1844_s9 }
 0x1d6   : > { %p1258_p13 = pnand %p1257_p4, %p1562_p5 }
 0x1d7   : > { %p1263_p11 = por %p1262_p1, %p1261_p12 }
 0x1d8   : > { %p1259_p2 = pneg %p1258_p13 }
 0x1d9   : > { %p1265_p6 = por %p1264_p8, %p1263_p11 }
 0x1db   : > { %p1266_p10 = pnand %p1265_p6, %p1259_p2 }
 0x1dd   : > { %1269 = shalt.err (!%p1266_p10)
}
 0x1de   : > { %s1346_s26 = smov 512   ;;  %s1347_s28 = smov 32  }
 0x1df   : > { %997 = dma.vmem_to_hbm [thread:$0]  (%p1562_p5), %s1846_s30, 2048, %s1844_s9, %s790_s7, %s1346_s26, %s1346_s26, %s1347_s28  }
 0x1e0 PF: > { %s1932_s21 = sld [smem:[#allocation16_spill]]  ;;  %s1933_s6 = sld [smem:[#allocation17_spill]] }
 0x1e1   : > { %p1935_p7 = scmp.ge.s32.totalorder %s1332_s23, 2 }
 0x1e6   : > { %s820_s12 = sand.u32 1, %s1932_s21   ;;  %p1934_p3 = scmp.ne.s32.totalorder %s1933_s6, 0 }
 0x1e7   : > { %s821_s16 = scalar_lea.sflag [#allocation4], %s820_s12 }
 0x1e8   : > { %p1017_p9 = pnand %p1935_p7, %p1934_p3 }
 0x1ea   : > { %1307 = dma.done.wait (!%p1017_p9), %s821_s16, 2048  }
 0x1eb   : > { %1309 = vsyncadd (!%p1017_p9), %s821_s16, 4294965248  ;;  %s23_s23 = sadd.s32 1, %s1332_s23   ;;  %s1936_s18 = smov %s1316_s19 }
 0x1ec   : > { %p20_p0 = scmp.ge.s32.totalorder %s23_s23, 4   ;;  %s1937_s19 = smov %s1320_s20 }
 0x1ed   : > { %s1938_s20 = smov %s1571_s14  ;;  %s1939_s21 = smov %s1328_s22 }
 0x1ee   : > { %s1940_s22 = smov %s1942_s24  ;;  %22 = sbr.rel (!%p20_p0) target bundleno = 8 (0x8), region = 101 }
 0x1f5   :  { %826 = vsyncpa [#allocation3], 1 }
 0x1f6   :  { %828 = vsyncpa [#allocation3 + $0x1], 1 }
 0x1f7   :  { %829 = vsyncpa [#allocation6], 1 }
 0x1f8   :  { %830 = vsyncpa [#allocation9], 1 }
 0x1f9   :  { %831 = vsyncpa [#allocation4], 1 }
 0x1fa   :  { %833 = vsyncpa [#allocation4 + $0x1], 1 }

</bundles_post_ra>
